<compile_context>
chip_gen: v7x
topology: tpu7x:2x2x1
jax: 0.10.0
libtpu: 0.0.40
codegen_flags: <defaults>
</compile_context>

<pallas_src>
import functools

import jax
import jax.numpy as jnp
from jax import lax
from jax.experimental import pallas as pl
from jax.experimental.pallas import tpu as pltpu


_VMEM_LIMIT_BYTES = 32 * 1024 * 1024      # safe on v5e/v6e/v7x, above v5e default
_BLOCK_BUDGET_BYTES = 4 * 1024 * 1024     # per-step input block target (x2 for dbuf)


# ----------------------------- Pallas kernels -----------------------------

def _layernorm_rows(y, gamma, beta, eps):
    """LayerNorm of y:(Wo, C) over the lane dim C. One-pass stats, f32."""
    c = y.shape[-1]
    s = jnp.sum(y, axis=-1, keepdims=True)
    ss = jnp.sum(y * y, axis=-1, keepdims=True)
    mean = s * (1.0 / c)
    var = jnp.maximum(ss * (1.0 / c) - mean * mean, 0.0)
    return (y - mean) * lax.rsqrt(var + eps) * gamma + beta


def _fused_agg_kernel(x_ref, w_ref, g_ref, b_ref, q_ref, kv_ref, *, q_k, kv_k, eps):
    # x_ref : (R, Kq*Kq, Wo_q, C)   input patches (q-major window layout)
    # w_ref : (Kq*Kq, C)            depthwise conv weights, kk = kh*Kq + kw
    # g_ref/b_ref : (1, C)          LayerNorm gamma / beta
    # q_ref : (R, Wo_q, C)
    # kv_ref: (R, rr, Wo_q, rr*C)   rr = Kq // Kv ; kv column w' = wo*rr + c_sub
    rows = x_ref.shape[0]
    kk_total = q_k * q_k
    rr = q_k // kv_k
    c = x_ref.shape[-1]
    w = w_ref[...].astype(jnp.float32)
    g = g_ref[...].astype(jnp.float32)
    b = b_ref[...].astype(jnp.float32)

    def body(r, carry):
        # Depthwise conv (q aggregation): leading-axis accumulate, pure VPU.
        acc = x_ref[r, 0].astype(jnp.float32) * w[0]
        for kk in range(1, kk_total):
            acc = acc + x_ref[r, kk].astype(jnp.float32) * w[kk]
        q_ref[r] = _layernorm_rows(acc, g, b, eps).astype(q_ref.dtype)

        # Max-pool (kv aggregation): rr x rr pooled outputs per q row.
        for r_sub in range(rr):
            for c_sub in range(rr):
                pooled = None
                for dh in range(kv_k):
                    for dw in range(kv_k):
                        kk = (r_sub * kv_k + dh) * q_k + (c_sub * kv_k + dw)
                        v = x_ref[r, kk].astype(jnp.float32)
                        pooled = v if pooled is None else jnp.maximum(pooled, v)
                out = _layernorm_rows(pooled, g, b, eps).astype(kv_ref.dtype)
                kv_ref[r, r_sub, :, c_sub * c:(c_sub + 1) * c] = out
        return carry

    lax.fori_loop(0, rows, body, 0)


def _q_agg_kernel(x_ref, w_ref, g_ref, b_ref, o_ref, *, q_k, eps):
    # x_ref: (R, Kq*Kq, Wo, C), w_ref: (Kq*Kq, C), o_ref: (R, Wo, C)
    rows = x_ref.shape[0]
    kk_total = q_k * q_k
    w = w_ref[...].astype(jnp.float32)
    g = g_ref[...].astype(jnp.float32)
    b = b_ref[...].astype(jnp.float32)

    def body(r, carry):
        acc = x_ref[r, 0].astype(jnp.float32) * w[0]
        for kk in range(1, kk_total):
            acc = acc + x_ref[r, kk].astype(jnp.float32) * w[kk]
        o_ref[r] = _layernorm_rows(acc, g, b, eps).astype(o_ref.dtype)
        return carry

    lax.fori_loop(0, rows, body, 0)


def _kv_agg_kernel(x_ref, g_ref, b_ref, o_ref, *, kv_k, eps):
    # x_ref: (R, Kv*Kv, Wo, C), o_ref: (R, Wo, C)
    rows = x_ref.shape[0]
    kk_total = kv_k * kv_k
    g = g_ref[...].astype(jnp.float32)
    b = b_ref[...].astype(jnp.float32)

    def body(r, carry):
        pooled = x_ref[r, 0].astype(jnp.float32)
        for kk in range(1, kk_total):
            pooled = jnp.maximum(pooled, x_ref[r, kk].astype(jnp.float32))
        o_ref[r] = _layernorm_rows(pooled, g, b, eps).astype(o_ref.dtype)
        return carry

    lax.fori_loop(0, rows, body, 0)


# ------------------------------ Wrapper glue -------------------------------

def _to_patches(x_nchw, k):
    """(B,C,H,W) -> (B*Ho, k*k, Wo, C) with one XLA transpose (floor mode)."""
    B, C, H, W = x_nchw.shape
    Ho, Wo = H // k, W // k
    x = x_nchw[:, :, :Ho * k, :Wo * k]
    x = x.reshape(B, C, Ho, k, Wo, k)
    x = jnp.transpose(x, (0, 2, 3, 5, 4, 1))        # (B, Ho, kh, kw, Wo, C)
    return x.reshape(B * Ho, k * k, Wo, C), Ho, Wo


def _pick_rows(n_rows, row_bytes, budget=_BLOCK_BUDGET_BYTES, max_rows=128):
    """Largest divisor of n_rows keeping the input block under `budget`, with
    grid length >= 2 so v7x can shard the parallel axis across its 2 TCs."""
    r = int(max(1, min(max_rows, budget // max(row_bytes, 1))))
    if n_rows >= 2:
        r = min(r, n_rows // 2)
    r = max(1, min(r, n_rows))
    while n_rows % r:
        r -= 1
    return r


def _compiler_params():
    return pltpu.CompilerParams(dimension_semantics=("parallel",),
                                vmem_limit_bytes=_VMEM_LIMIT_BYTES)


def _fused_path(x_nchw, w_kk, gamma2, beta2, q_k, kv_k, eps):
    """Self-attention case: one pallas_call produces both q and kv outputs."""
    B, C, H, W = x_nchw.shape
    patches, Ho, Wo = _to_patches(x_nchw, q_k)
    rr = q_k // kv_k
    n_rows = B * Ho
    row_bytes = q_k * q_k * Wo * C * x_nchw.dtype.itemsize
    R = _pick_rows(n_rows, row_bytes)

    kern = functools.partial(_fused_agg_kernel, q_k=q_k, kv_k=kv_k, eps=eps)
    q_arr, kv_arr = pl.pallas_call(
        kern,
        out_shape=(
            jax.ShapeDtypeStruct((n_rows, Wo, C), x_nchw.dtype),
            jax.ShapeDtypeStruct((n_rows, rr, Wo, rr * C), x_nchw.dtype),
        ),
        grid=(n_rows // R,),
        in_specs=[
            pl.BlockSpec((R, q_k * q_k, Wo, C), lambda i: (i, 0, 0, 0)),
            pl.BlockSpec((q_k * q_k, C), lambda i: (0, 0)),
            pl.BlockSpec((1, C), lambda i: (0, 0)),
            pl.BlockSpec((1, C), lambda i: (0, 0)),
        ],
        out_specs=(
            pl.BlockSpec((R, Wo, C), lambda i: (i, 0, 0)),
            pl.BlockSpec((R, rr, Wo, rr * C), lambda i: (i, 0, 0, 0)),
        ),
        compiler_params=_compiler_params(),
    )(patches, w_kk, gamma2, beta2)

    q_out = q_arr.reshape(B, Ho, Wo, C)
    # (B*Ho, rr, Wo, rr*C) -> (B, Ho*rr, Wo*rr, C): pure row-major regrouping.
    kv_out = kv_arr.reshape(B, Ho * rr, Wo * rr, C)
    return q_out, kv_out


def _q_path(x_nchw, w_kk, gamma2, beta2, q_k, eps):
    B, C, H, W = x_nchw.shape
    patches, Ho, Wo = _to_patches(x_nchw, q_k)
    n_rows = B * Ho
    R = _pick_rows(n_rows, q_k * q_k * Wo * C * x_nchw.dtype.itemsize)

    kern = functools.partial(_q_agg_kernel, q_k=q_k, eps=eps)
    out = pl.pallas_call(
        kern,
        out_shape=jax.ShapeDtypeStruct((n_rows, Wo, C), x_nchw.dtype),
        grid=(n_rows // R,),
        in_specs=[
            pl.BlockSpec((R, q_k * q_k, Wo, C), lambda i: (i, 0, 0, 0)),
            pl.BlockSpec((q_k * q_k, C), lambda i: (0, 0)),
            pl.BlockSpec((1, C), lambda i: (0, 0)),
            pl.BlockSpec((1, C), lambda i: (0, 0)),
        ],
        out_specs=pl.BlockSpec((R, Wo, C), lambda i: (i, 0, 0)),
        compiler_params=_compiler_params(),
    )(patches, w_kk, gamma2, beta2)
    return out.reshape(B, Ho, Wo, C)


def _kv_path(x_nchw, gamma2, beta2, kv_k, eps):
    B, C, H, W = x_nchw.shape
    patches, Ho, Wo = _to_patches(x_nchw, kv_k)
    n_rows = B * Ho
    R = _pick_rows(n_rows, kv_k * kv_k * Wo * C * x_nchw.dtype.itemsize)

    kern = functools.partial(_kv_agg_kernel, kv_k=kv_k, eps=eps)
    out = pl.pallas_call(
        kern,
        out_shape=jax.ShapeDtypeStruct((n_rows, Wo, C), x_nchw.dtype),
        grid=(n_rows // R,),
        in_specs=[
            pl.BlockSpec((R, kv_k * kv_k, Wo, C), lambda i: (i, 0, 0, 0)),
            pl.BlockSpec((1, C), lambda i: (0, 0)),
            pl.BlockSpec((1, C), lambda i: (0, 0)),
        ],
        out_specs=pl.BlockSpec((R, Wo, C), lambda i: (i, 0, 0)),
        compiler_params=_compiler_params(),
    )(patches, gamma2, beta2)
    return out.reshape(B, Ho, Wo, C)


def efficientloftr_aggregation_layer(hidden_states, encoder_hidden_states, params,
                                     *, q_kernel_size, q_stride,
                                     kv_kernel_size, kv_stride, eps=1e-5):
    """hidden_states / encoder_hidden_states: NCHW (B, C, H, W), like PyTorch.

    Returns (hidden_states_out, encoder_hidden_states_out), both NHWC
    (B, H_out, W_out, C), matching PyTorch's permute(0, 2, 3, 1) + LayerNorm.
    """
    if q_kernel_size != q_stride or kv_kernel_size != kv_stride:
        # TODO(synk): overlapping aggregation windows (kernel_size != stride) not implemented.
        raise NotImplementedError("only kernel_size == stride supported")

    B, C, H, W = hidden_states.shape
    w_conv = params["q_aggregation_weight"]            # (C, 1, Kq, Kq)
    gamma2 = params["norm_weight"].reshape(1, C)
    beta2 = params["norm_bias"].reshape(1, C)
    # (C, 1, Kq, Kq) -> (Kq*Kq, C) matching the kk = kh*Kq + kw patch ordering.
    w_kk = jnp.transpose(w_conv[:, 0], (1, 2, 0)).reshape(
        q_kernel_size * q_kernel_size, C)

    can_fuse = (encoder_hidden_states is None
                and q_kernel_size % kv_kernel_size == 0
                and H % q_kernel_size == 0
                and W % q_kernel_size == 0)
    if can_fuse:
        return _fused_path(hidden_states, w_kk, gamma2, beta2,
                           q_kernel_size, kv_kernel_size, eps)

    kv_src = encoder_hidden_states if encoder_hidden_states is not None else hidden_states
    q_out = _q_path(hidden_states, w_kk, gamma2, beta2, q_kernel_size, eps)
    kv_out = _kv_path(kv_src, gamma2, beta2, kv_kernel_size, eps)
    return q_out, kv_out


# ------------------------------ Pure-JAX reference ------------------------------

def _reference(hidden_states, encoder_hidden_states, params,
               q_k, q_s, kv_k, kv_s, eps=1e-5):
    w_conv = params["q_aggregation_weight"]
    gamma = params["norm_weight"]
    beta = params["norm_bias"]
    C = hidden_states.shape[1]
    kv_src = encoder_hidden_states if encoder_hidden_states is not None else hidden_states

    q = lax.conv_general_dilated(hidden_states, w_conv, (q_s, q_s), "VALID",
                                 dimension_numbers=("NCHW", "OIHW", "NCHW"),
                                 feature_group_count=C)
    kv = lax.reduce_window(kv_src, -jnp.inf, lax.max,
                           (1, 1, kv_k, kv_k), (1, 1, kv_s, kv_s), "VALID")

    def ln(x_nchw):
        x = jnp.transpose(x_nchw, (0, 2, 3, 1))
        m = jnp.mean(x, -1, keepdims=True)
        v = jnp.mean(jnp.square(x - m), -1, keepdims=True)
        return (x - m) / jnp.sqrt(v + eps) * gamma + beta

    return ln(q), ln(kv)


# ----------------------------------- Main -----------------------------------

if __name__ == "__main__":
    # Small config consistent with EfficientLoFTRConfig semantics (lane-dense C).
    B, C, H, W = 2, 128, 32, 32
    q_k = q_s = 4       # q_aggregation_kernel_size / stride
    kv_k = kv_s = 2     # kv_aggregation_kernel_size / stride

    key = jax.random.PRNGKey(0)
    k1, k2, k3, k4, k5 = jax.random.split(key, 5)
    hidden_states = jax.random.normal(k1, (B, C, H, W), jnp.float32)
    encoder_hidden_states = jax.random.normal(k2, (B, C, H, W), jnp.float32)

    params = {
        "q_aggregation_weight": 0.1 * jax.random.normal(k3, (C, 1, q_k, q_k), jnp.float32),
        "norm_weight": 1.0 + 0.1 * jax.random.normal(k4, (C,), jnp.float32),
        "norm_bias": 0.1 * jax.random.normal(k5, (C,), jnp.float32),
    }

    run = jax.jit(functools.partial(
        efficientloftr_aggregation_layer,
        q_kernel_size=q_k, q_stride=q_s,
        kv_kernel_size=kv_k, kv_stride=kv_s))

    # Self-attention case (encoder_hidden_states is None) -> fused q/kv kernel.
    q_self, kv_self = run(hidden_states, None, params)
    jax.block_until_ready((q_self, kv_self))
    q_self_ref, kv_self_ref = _reference(hidden_states, None, params, q_k, q_s, kv_k, kv_s)

    # Cross-attention case -> separate q / kv kernels.
    q_cross, kv_cross = run(hidden_states, encoder_hidden_states, params)
    jax.block_until_ready((q_cross, kv_cross))
    q_cross_ref, kv_cross_ref = _reference(hidden_states, encoder_hidden_states, params,
                                           q_k, q_s, kv_k, kv_s)

    for got, want in [(q_self, q_self_ref), (kv_self, kv_self_ref),
                      (q_cross, q_cross_ref), (kv_cross, kv_cross_ref)]:
        assert got.shape == want.shape, (got.shape, want.shape)
        assert jnp.allclose(got, want, atol=1e-4, rtol=1e-4), float(jnp.max(jnp.abs(got - want)))

    print("KERNEL_OK")
</pallas_src>

<mosaic_0001>
module attributes {stable_mosaic.version = 11 : i64} {
  func.func @_fused_agg_kernel(%arg0: i32, %arg1: memref<8x16x8x128xf32, #tpu.memory_space<vmem>>, %arg2: memref<16x128xf32, #tpu.memory_space<vmem>>, %arg3: memref<1x128xf32, #tpu.memory_space<vmem>>, %arg4: memref<1x128xf32, #tpu.memory_space<vmem>>, %arg5: memref<8x8x128xf32, #tpu.memory_space<vmem>>, %arg6: memref<8x2x8x256xf32, #tpu.memory_space<vmem>>) attributes {dimension_semantics = [#tpu.dimension_semantics<parallel>], iteration_bounds = array<i64: 2>, scalar_prefetch = 0 : i64, scratch_operands = 0 : i64, tpu.core_type = #tpu.core_type<tc>, window_params = [{transform_indices = @transform_0, window_bounds = array<i64: 8, 16, 8, 128>}, {pipeline_mode = #tpu.pipeline_mode<synchronous>, transform_indices = @transform_1, window_bounds = array<i64: 16, 128>}, {pipeline_mode = #tpu.pipeline_mode<synchronous>, transform_indices = @transform_2, window_bounds = array<i64: 1, 128>}, {pipeline_mode = #tpu.pipeline_mode<synchronous>, transform_indices = @transform_3, window_bounds = array<i64: 1, 128>}, {transform_indices = @transform_4, window_bounds = array<i64: 8, 8, 128>}, {transform_indices = @transform_5, window_bounds = array<i64: 8, 2, 8, 256>}]} {
    %c0 = arith.constant 0 : index
    %c0_0 = arith.constant 0 : index
    %0 = vector.load %arg2[%c0, %c0_0] : memref<16x128xf32, #tpu.memory_space<vmem>>, vector<16x128xf32>
    %c0_1 = arith.constant 0 : index
    %c0_2 = arith.constant 0 : index
    %1 = vector.load %arg3[%c0_1, %c0_2] : memref<1x128xf32, #tpu.memory_space<vmem>>, vector<1x128xf32>
    %c0_3 = arith.constant 0 : index
    %c0_4 = arith.constant 0 : index
    %2 = vector.load %arg4[%c0_3, %c0_4] : memref<1x128xf32, #tpu.memory_space<vmem>>, vector<1x128xf32>
    %c0_i32 = arith.constant 0 : i32
    %c8_i32 = arith.constant 8 : i32
    %3 = arith.addi %c0_i32, %c8_i32 : i32
    %c1_i32 = arith.constant 1 : i32
    scf.for %arg7 = %c0_i32 to %3 step %c1_i32  : i32 {
      %4 = arith.index_cast %arg7 : i32 to index
      %c0_6 = arith.constant 0 : index
      %c0_7 = arith.constant 0 : index
      %c0_8 = arith.constant 0 : index
      %5 = vector.load %arg1[%4, %c0_6, %c0_7, %c0_8] : memref<8x16x8x128xf32, #tpu.memory_space<vmem>>, vector<1x1x8x128xf32>
      %6 = vector.shape_cast %5 : vector<1x1x8x128xf32> to vector<8x128xf32>
      %7 = vector.extract_strided_slice %0 {offsets = [0, 0], sizes = [1, 128], strides = [1, 1]} : vector<16x128xf32> to vector<1x128xf32>
      %8 = vector.shape_cast %7 : vector<1x128xf32> to vector<128xf32>
      %9 = vector.shape_cast %8 : vector<128xf32> to vector<1x128xf32>
      %10 = vector.broadcast %9 : vector<1x128xf32> to vector<8x128xf32>
      %11 = arith.mulf %6, %10 : vector<8x128xf32>
      %12 = arith.index_cast %arg7 : i32 to index
      %c1 = arith.constant 1 : index
      %c0_9 = arith.constant 0 : index
      %c0_10 = arith.constant 0 : index
      %13 = vector.load %arg1[%12, %c1, %c0_9, %c0_10] : memref<8x16x8x128xf32, #tpu.memory_space<vmem>>, vector<1x1x8x128xf32>
      %14 = vector.shape_cast %13 : vector<1x1x8x128xf32> to vector<8x128xf32>
      %15 = vector.extract_strided_slice %0 {offsets = [1, 0], sizes = [1, 128], strides = [1, 1]} : vector<16x128xf32> to vector<1x128xf32>
      %16 = vector.shape_cast %15 : vector<1x128xf32> to vector<128xf32>
      %17 = vector.shape_cast %16 : vector<128xf32> to vector<1x128xf32>
      %18 = vector.broadcast %17 : vector<1x128xf32> to vector<8x128xf32>
      %19 = arith.mulf %14, %18 : vector<8x128xf32>
      %20 = arith.addf %11, %19 : vector<8x128xf32>
      %21 = arith.index_cast %arg7 : i32 to index
      %c2 = arith.constant 2 : index
      %c0_11 = arith.constant 0 : index
      %c0_12 = arith.constant 0 : index
      %22 = vector.load %arg1[%21, %c2, %c0_11, %c0_12] : memref<8x16x8x128xf32, #tpu.memory_space<vmem>>, vector<1x1x8x128xf32>
      %23 = vector.shape_cast %22 : vector<1x1x8x128xf32> to vector<8x128xf32>
      %24 = vector.extract_strided_slice %0 {offsets = [2, 0], sizes = [1, 128], strides = [1, 1]} : vector<16x128xf32> to vector<1x128xf32>
      %25 = vector.shape_cast %24 : vector<1x128xf32> to vector<128xf32>
      %26 = vector.shape_cast %25 : vector<128xf32> to vector<1x128xf32>
      %27 = vector.broadcast %26 : vector<1x128xf32> to vector<8x128xf32>
      %28 = arith.mulf %23, %27 : vector<8x128xf32>
      %29 = arith.addf %20, %28 : vector<8x128xf32>
      %30 = arith.index_cast %arg7 : i32 to index
      %c3 = arith.constant 3 : index
      %c0_13 = arith.constant 0 : index
      %c0_14 = arith.constant 0 : index
      %31 = vector.load %arg1[%30, %c3, %c0_13, %c0_14] : memref<8x16x8x128xf32, #tpu.memory_space<vmem>>, vector<1x1x8x128xf32>
      %32 = vector.shape_cast %31 : vector<1x1x8x128xf32> to vector<8x128xf32>
      %33 = vector.extract_strided_slice %0 {offsets = [3, 0], sizes = [1, 128], strides = [1, 1]} : vector<16x128xf32> to vector<1x128xf32>
      %34 = vector.shape_cast %33 : vector<1x128xf32> to vector<128xf32>
      %35 = vector.shape_cast %34 : vector<128xf32> to vector<1x128xf32>
      %36 = vector.broadcast %35 : vector<1x128xf32> to vector<8x128xf32>
      %37 = arith.mulf %32, %36 : vector<8x128xf32>
      %38 = arith.addf %29, %37 : vector<8x128xf32>
      %39 = arith.index_cast %arg7 : i32 to index
      %c4 = arith.constant 4 : index
      %c0_15 = arith.constant 0 : index
      %c0_16 = arith.constant 0 : index
      %40 = vector.load %arg1[%39, %c4, %c0_15, %c0_16] : memref<8x16x8x128xf32, #tpu.memory_space<vmem>>, vector<1x1x8x128xf32>
      %41 = vector.shape_cast %40 : vector<1x1x8x128xf32> to vector<8x128xf32>
      %42 = vector.extract_strided_slice %0 {offsets = [4, 0], sizes = [1, 128], strides = [1, 1]} : vector<16x128xf32> to vector<1x128xf32>
      %43 = vector.shape_cast %42 : vector<1x128xf32> to vector<128xf32>
      %44 = vector.shape_cast %43 : vector<128xf32> to vector<1x128xf32>
      %45 = vector.broadcast %44 : vector<1x128xf32> to vector<8x128xf32>
      %46 = arith.mulf %41, %45 : vector<8x128xf32>
      %47 = arith.addf %38, %46 : vector<8x128xf32>
      %48 = arith.index_cast %arg7 : i32 to index
      %c5 = arith.constant 5 : index
      %c0_17 = arith.constant 0 : index
      %c0_18 = arith.constant 0 : index
      %49 = vector.load %arg1[%48, %c5, %c0_17, %c0_18] : memref<8x16x8x128xf32, #tpu.memory_space<vmem>>, vector<1x1x8x128xf32>
      %50 = vector.shape_cast %49 : vector<1x1x8x128xf32> to vector<8x128xf32>
      %51 = vector.extract_strided_slice %0 {offsets = [5, 0], sizes = [1, 128], strides = [1, 1]} : vector<16x128xf32> to vector<1x128xf32>
      %52 = vector.shape_cast %51 : vector<1x128xf32> to vector<128xf32>
      %53 = vector.shape_cast %52 : vector<128xf32> to vector<1x128xf32>
      %54 = vector.broadcast %53 : vector<1x128xf32> to vector<8x128xf32>
      %55 = arith.mulf %50, %54 : vector<8x128xf32>
      %56 = arith.addf %47, %55 : vector<8x128xf32>
      %57 = arith.index_cast %arg7 : i32 to index
      %c6 = arith.constant 6 : index
      %c0_19 = arith.constant 0 : index
      %c0_20 = arith.constant 0 : index
      %58 = vector.load %arg1[%57, %c6, %c0_19, %c0_20] : memref<8x16x8x128xf32, #tpu.memory_space<vmem>>, vector<1x1x8x128xf32>
      %59 = vector.shape_cast %58 : vector<1x1x8x128xf32> to vector<8x128xf32>
      %60 = vector.extract_strided_slice %0 {offsets = [6, 0], sizes = [1, 128], strides = [1, 1]} : vector<16x128xf32> to vector<1x128xf32>
      %61 = vector.shape_cast %60 : vector<1x128xf32> to vector<128xf32>
      %62 = vector.shape_cast %61 : vector<128xf32> to vector<1x128xf32>
      %63 = vector.broadcast %62 : vector<1x128xf32> to vector<8x128xf32>
      %64 = arith.mulf %59, %63 : vector<8x128xf32>
      %65 = arith.addf %56, %64 : vector<8x128xf32>
      %66 = arith.index_cast %arg7 : i32 to index
      %c7 = arith.constant 7 : index
      %c0_21 = arith.constant 0 : index
      %c0_22 = arith.constant 0 : index
      %67 = vector.load %arg1[%66, %c7, %c0_21, %c0_22] : memref<8x16x8x128xf32, #tpu.memory_space<vmem>>, vector<1x1x8x128xf32>
      %68 = vector.shape_cast %67 : vector<1x1x8x128xf32> to vector<8x128xf32>
      %69 = vector.extract_strided_slice %0 {offsets = [7, 0], sizes = [1, 128], strides = [1, 1]} : vector<16x128xf32> to vector<1x128xf32>
      %70 = vector.shape_cast %69 : vector<1x128xf32> to vector<128xf32>
      %71 = vector.shape_cast %70 : vector<128xf32> to vector<1x128xf32>
      %72 = vector.broadcast %71 : vector<1x128xf32> to vector<8x128xf32>
      %73 = arith.mulf %68, %72 : vector<8x128xf32>
      %74 = arith.addf %65, %73 : vector<8x128xf32>
      %75 = arith.index_cast %arg7 : i32 to index
      %c8 = arith.constant 8 : index
      %c0_23 = arith.constant 0 : index
      %c0_24 = arith.constant 0 : index
      %76 = vector.load %arg1[%75, %c8, %c0_23, %c0_24] : memref<8x16x8x128xf32, #tpu.memory_space<vmem>>, vector<1x1x8x128xf32>
      %77 = vector.shape_cast %76 : vector<1x1x8x128xf32> to vector<8x128xf32>
      %78 = vector.extract_strided_slice %0 {offsets = [8, 0], sizes = [1, 128], strides = [1, 1]} : vector<16x128xf32> to vector<1x128xf32>
      %79 = vector.shape_cast %78 : vector<1x128xf32> to vector<128xf32>
      %80 = vector.shape_cast %79 : vector<128xf32> to vector<1x128xf32>
      %81 = vector.broadcast %80 : vector<1x128xf32> to vector<8x128xf32>
      %82 = arith.mulf %77, %81 : vector<8x128xf32>
      %83 = arith.addf %74, %82 : vector<8x128xf32>
      %84 = arith.index_cast %arg7 : i32 to index
      %c9 = arith.constant 9 : index
      %c0_25 = arith.constant 0 : index
      %c0_26 = arith.constant 0 : index
      %85 = vector.load %arg1[%84, %c9, %c0_25, %c0_26] : memref<8x16x8x128xf32, #tpu.memory_space<vmem>>, vector<1x1x8x128xf32>
      %86 = vector.shape_cast %85 : vector<1x1x8x128xf32> to vector<8x128xf32>
      %87 = vector.extract_strided_slice %0 {offsets = [9, 0], sizes = [1, 128], strides = [1, 1]} : vector<16x128xf32> to vector<1x128xf32>
      %88 = vector.shape_cast %87 : vector<1x128xf32> to vector<128xf32>
      %89 = vector.shape_cast %88 : vector<128xf32> to vector<1x128xf32>
      %90 = vector.broadcast %89 : vector<1x128xf32> to vector<8x128xf32>
      %91 = arith.mulf %86, %90 : vector<8x128xf32>
      %92 = arith.addf %83, %91 : vector<8x128xf32>
      %93 = arith.index_cast %arg7 : i32 to index
      %c10 = arith.constant 10 : index
      %c0_27 = arith.constant 0 : index
      %c0_28 = arith.constant 0 : index
      %94 = vector.load %arg1[%93, %c10, %c0_27, %c0_28] : memref<8x16x8x128xf32, #tpu.memory_space<vmem>>, vector<1x1x8x128xf32>
      %95 = vector.shape_cast %94 : vector<1x1x8x128xf32> to vector<8x128xf32>
      %96 = vector.extract_strided_slice %0 {offsets = [10, 0], sizes = [1, 128], strides = [1, 1]} : vector<16x128xf32> to vector<1x128xf32>
      %97 = vector.shape_cast %96 : vector<1x128xf32> to vector<128xf32>
      %98 = vector.shape_cast %97 : vector<128xf32> to vector<1x128xf32>
      %99 = vector.broadcast %98 : vector<1x128xf32> to vector<8x128xf32>
      %100 = arith.mulf %95, %99 : vector<8x128xf32>
      %101 = arith.addf %92, %100 : vector<8x128xf32>
      %102 = arith.index_cast %arg7 : i32 to index
      %c11 = arith.constant 11 : index
      %c0_29 = arith.constant 0 : index
      %c0_30 = arith.constant 0 : index
      %103 = vector.load %arg1[%102, %c11, %c0_29, %c0_30] : memref<8x16x8x128xf32, #tpu.memory_space<vmem>>, vector<1x1x8x128xf32>
      %104 = vector.shape_cast %103 : vector<1x1x8x128xf32> to vector<8x128xf32>
      %105 = vector.extract_strided_slice %0 {offsets = [11, 0], sizes = [1, 128], strides = [1, 1]} : vector<16x128xf32> to vector<1x128xf32>
      %106 = vector.shape_cast %105 : vector<1x128xf32> to vector<128xf32>
      %107 = vector.shape_cast %106 : vector<128xf32> to vector<1x128xf32>
      %108 = vector.broadcast %107 : vector<1x128xf32> to vector<8x128xf32>
      %109 = arith.mulf %104, %108 : vector<8x128xf32>
      %110 = arith.addf %101, %109 : vector<8x128xf32>
      %111 = arith.index_cast %arg7 : i32 to index
      %c12 = arith.constant 12 : index
      %c0_31 = arith.constant 0 : index
      %c0_32 = arith.constant 0 : index
      %112 = vector.load %arg1[%111, %c12, %c0_31, %c0_32] : memref<8x16x8x128xf32, #tpu.memory_space<vmem>>, vector<1x1x8x128xf32>
      %113 = vector.shape_cast %112 : vector<1x1x8x128xf32> to vector<8x128xf32>
      %114 = vector.extract_strided_slice %0 {offsets = [12, 0], sizes = [1, 128], strides = [1, 1]} : vector<16x128xf32> to vector<1x128xf32>
      %115 = vector.shape_cast %114 : vector<1x128xf32> to vector<128xf32>
      %116 = vector.shape_cast %115 : vector<128xf32> to vector<1x128xf32>
      %117 = vector.broadcast %116 : vector<1x128xf32> to vector<8x128xf32>
      %118 = arith.mulf %113, %117 : vector<8x128xf32>
      %119 = arith.addf %110, %118 : vector<8x128xf32>
      %120 = arith.index_cast %arg7 : i32 to index
      %c13 = arith.constant 13 : index
      %c0_33 = arith.constant 0 : index
      %c0_34 = arith.constant 0 : index
      %121 = vector.load %arg1[%120, %c13, %c0_33, %c0_34] : memref<8x16x8x128xf32, #tpu.memory_space<vmem>>, vector<1x1x8x128xf32>
      %122 = vector.shape_cast %121 : vector<1x1x8x128xf32> to vector<8x128xf32>
      %123 = vector.extract_strided_slice %0 {offsets = [13, 0], sizes = [1, 128], strides = [1, 1]} : vector<16x128xf32> to vector<1x128xf32>
      %124 = vector.shape_cast %123 : vector<1x128xf32> to vector<128xf32>
      %125 = vector.shape_cast %124 : vector<128xf32> to vector<1x128xf32>
      %126 = vector.broadcast %125 : vector<1x128xf32> to vector<8x128xf32>
      %127 = arith.mulf %122, %126 : vector<8x128xf32>
      %128 = arith.addf %119, %127 : vector<8x128xf32>
      %129 = arith.index_cast %arg7 : i32 to index
      %c14 = arith.constant 14 : index
      %c0_35 = arith.constant 0 : index
      %c0_36 = arith.constant 0 : index
      %130 = vector.load %arg1[%129, %c14, %c0_35, %c0_36] : memref<8x16x8x128xf32, #tpu.memory_space<vmem>>, vector<1x1x8x128xf32>
      %131 = vector.shape_cast %130 : vector<1x1x8x128xf32> to vector<8x128xf32>
      %132 = vector.extract_strided_slice %0 {offsets = [14, 0], sizes = [1, 128], strides = [1, 1]} : vector<16x128xf32> to vector<1x128xf32>
      %133 = vector.shape_cast %132 : vector<1x128xf32> to vector<128xf32>
      %134 = vector.shape_cast %133 : vector<128xf32> to vector<1x128xf32>
      %135 = vector.broadcast %134 : vector<1x128xf32> to vector<8x128xf32>
      %136 = arith.mulf %131, %135 : vector<8x128xf32>
      %137 = arith.addf %128, %136 : vector<8x128xf32>
      %138 = arith.index_cast %arg7 : i32 to index
      %c15 = arith.constant 15 : index
      %c0_37 = arith.constant 0 : index
      %c0_38 = arith.constant 0 : index
      %139 = vector.load %arg1[%138, %c15, %c0_37, %c0_38] : memref<8x16x8x128xf32, #tpu.memory_space<vmem>>, vector<1x1x8x128xf32>
      %140 = vector.shape_cast %139 : vector<1x1x8x128xf32> to vector<8x128xf32>
      %141 = vector.extract_strided_slice %0 {offsets = [15, 0], sizes = [1, 128], strides = [1, 1]} : vector<16x128xf32> to vector<1x128xf32>
      %142 = vector.shape_cast %141 : vector<1x128xf32> to vector<128xf32>
      %143 = vector.shape_cast %142 : vector<128xf32> to vector<1x128xf32>
      %144 = vector.broadcast %143 : vector<1x128xf32> to vector<8x128xf32>
      %145 = arith.mulf %140, %144 : vector<8x128xf32>
      %146 = arith.addf %137, %145 : vector<8x128xf32>
      %cst = arith.constant dense<0.000000e+00> : vector<8xf32>
      %147 = vector.multi_reduction <add>, %146, %cst [1] : vector<8x128xf32> to vector<8xf32>
      %148 = vector.shape_cast %147 : vector<8xf32> to vector<8x1xf32>
      %149 = arith.mulf %146, %146 : vector<8x128xf32>
      %cst_39 = arith.constant dense<0.000000e+00> : vector<8xf32>
      %150 = vector.multi_reduction <add>, %149, %cst_39 [1] : vector<8x128xf32> to vector<8xf32>
      %151 = vector.shape_cast %150 : vector<8xf32> to vector<8x1xf32>
      %cst_40 = arith.constant 7.812500e-03 : f32
      %152 = vector.broadcast %cst_40 : f32 to vector<8x1xf32>
      %153 = arith.mulf %148, %152 : vector<8x1xf32>
      %cst_41 = arith.constant 7.812500e-03 : f32
      %154 = vector.broadcast %cst_41 : f32 to vector<8x1xf32>
      %155 = arith.mulf %151, %154 : vector<8x1xf32>
      %156 = arith.mulf %153, %153 : vector<8x1xf32>
      %157 = arith.subf %155, %156 : vector<8x1xf32>
      %cst_42 = arith.constant 0.000000e+00 : f32
      %158 = vector.broadcast %cst_42 : f32 to vector<8x1xf32>
      %159 = arith.maximumf %157, %158 : vector<8x1xf32>
      %160 = vector.broadcast %153 : vector<8x1xf32> to vector<8x128xf32>
      %161 = arith.subf %146, %160 : vector<8x128xf32>
      %cst_43 = arith.constant 9.99999974E-6 : f32
      %162 = vector.broadcast %cst_43 : f32 to vector<8x1xf32>
      %163 = arith.addf %159, %162 : vector<8x1xf32>
      %164 = math.rsqrt %163 : vector<8x1xf32>
      %165 = vector.broadcast %164 : vector<8x1xf32> to vector<8x128xf32>
      %166 = arith.mulf %161, %165 : vector<8x128xf32>
      %167 = vector.broadcast %1 : vector<1x128xf32> to vector<8x128xf32>
      %168 = arith.mulf %166, %167 : vector<8x128xf32>
      %169 = vector.broadcast %2 : vector<1x128xf32> to vector<8x128xf32>
      %170 = arith.addf %168, %169 : vector<8x128xf32>
      %171 = arith.index_cast %arg7 : i32 to index
      %c0_44 = arith.constant 0 : index
      %c0_45 = arith.constant 0 : index
      %172 = vector.load %arg5[%171, %c0_44, %c0_45] : memref<8x8x128xf32, #tpu.memory_space<vmem>>, vector<1x8x128xf32>
      %173 = vector.shape_cast %172 : vector<1x8x128xf32> to vector<8x128xf32>
      %174 = vector.shape_cast %170 : vector<8x128xf32> to vector<1x8x128xf32>
      tpu.vector_store %arg5[%171, %c0_44, %c0_45], %174 {strides = array<i32>} : memref<8x8x128xf32, #tpu.memory_space<vmem>>, vector<1x8x128xf32>,
      %175 = arith.index_cast %arg7 : i32 to index
      %c0_46 = arith.constant 0 : index
      %c0_47 = arith.constant 0 : index
      %c0_48 = arith.constant 0 : index
      %176 = vector.load %arg1[%175, %c0_46, %c0_47, %c0_48] : memref<8x16x8x128xf32, #tpu.memory_space<vmem>>, vector<1x1x8x128xf32>
      %177 = vector.shape_cast %176 : vector<1x1x8x128xf32> to vector<8x128xf32>
      %178 = arith.index_cast %arg7 : i32 to index
      %c1_49 = arith.constant 1 : index
      %c0_50 = arith.constant 0 : index
      %c0_51 = arith.constant 0 : index
      %179 = vector.load %arg1[%178, %c1_49, %c0_50, %c0_51] : memref<8x16x8x128xf32, #tpu.memory_space<vmem>>, vector<1x1x8x128xf32>
      %180 = vector.shape_cast %179 : vector<1x1x8x128xf32> to vector<8x128xf32>
      %181 = arith.maximumf %177, %180 : vector<8x128xf32>
      %182 = arith.index_cast %arg7 : i32 to index
      %c4_52 = arith.constant 4 : index
      %c0_53 = arith.constant 0 : index
      %c0_54 = arith.constant 0 : index
      %183 = vector.load %arg1[%182, %c4_52, %c0_53, %c0_54] : memref<8x16x8x128xf32, #tpu.memory_space<vmem>>, vector<1x1x8x128xf32>
      %184 = vector.shape_cast %183 : vector<1x1x8x128xf32> to vector<8x128xf32>
      %185 = arith.maximumf %181, %184 : vector<8x128xf32>
      %186 = arith.index_cast %arg7 : i32 to index
      %c5_55 = arith.constant 5 : index
      %c0_56 = arith.constant 0 : index
      %c0_57 = arith.constant 0 : index
      %187 = vector.load %arg1[%186, %c5_55, %c0_56, %c0_57] : memref<8x16x8x128xf32, #tpu.memory_space<vmem>>, vector<1x1x8x128xf32>
      %188 = vector.shape_cast %187 : vector<1x1x8x128xf32> to vector<8x128xf32>
      %189 = arith.maximumf %185, %188 : vector<8x128xf32>
      %cst_58 = arith.constant dense<0.000000e+00> : vector<8xf32>
      %190 = vector.multi_reduction <add>, %189, %cst_58 [1] : vector<8x128xf32> to vector<8xf32>
      %191 = vector.shape_cast %190 : vector<8xf32> to vector<8x1xf32>
      %192 = arith.mulf %189, %189 : vector<8x128xf32>
      %cst_59 = arith.constant dense<0.000000e+00> : vector<8xf32>
      %193 = vector.multi_reduction <add>, %192, %cst_59 [1] : vector<8x128xf32> to vector<8xf32>
      %194 = vector.shape_cast %193 : vector<8xf32> to vector<8x1xf32>
      %cst_60 = arith.constant 7.812500e-03 : f32
      %195 = vector.broadcast %cst_60 : f32 to vector<8x1xf32>
      %196 = arith.mulf %191, %195 : vector<8x1xf32>
      %cst_61 = arith.constant 7.812500e-03 : f32
      %197 = vector.broadcast %cst_61 : f32 to vector<8x1xf32>
      %198 = arith.mulf %194, %197 : vector<8x1xf32>
      %199 = arith.mulf %196, %196 : vector<8x1xf32>
      %200 = arith.subf %198, %199 : vector<8x1xf32>
      %cst_62 = arith.constant 0.000000e+00 : f32
      %201 = vector.broadcast %cst_62 : f32 to vector<8x1xf32>
      %202 = arith.maximumf %200, %201 : vector<8x1xf32>
      %203 = vector.broadcast %196 : vector<8x1xf32> to vector<8x128xf32>
      %204 = arith.subf %189, %203 : vector<8x128xf32>
      %cst_63 = arith.constant 9.99999974E-6 : f32
      %205 = vector.broadcast %cst_63 : f32 to vector<8x1xf32>
      %206 = arith.addf %202, %205 : vector<8x1xf32>
      %207 = math.rsqrt %206 : vector<8x1xf32>
      %208 = vector.broadcast %207 : vector<8x1xf32> to vector<8x128xf32>
      %209 = arith.mulf %204, %208 : vector<8x128xf32>
      %210 = vector.broadcast %1 : vector<1x128xf32> to vector<8x128xf32>
      %211 = arith.mulf %209, %210 : vector<8x128xf32>
      %212 = vector.broadcast %2 : vector<1x128xf32> to vector<8x128xf32>
      %213 = arith.addf %211, %212 : vector<8x128xf32>
      %214 = arith.index_cast %arg7 : i32 to index
      %c0_64 = arith.constant 0 : index
      %c0_65 = arith.constant 0 : index
      %c0_66 = arith.constant 0 : index
      %215 = vector.load %arg6[%214, %c0_64, %c0_65, %c0_66] : memref<8x2x8x256xf32, #tpu.memory_space<vmem>>, vector<1x1x8x128xf32>
      %216 = vector.shape_cast %215 : vector<1x1x8x128xf32> to vector<8x128xf32>
      %217 = vector.shape_cast %213 : vector<8x128xf32> to vector<1x1x8x128xf32>
      tpu.vector_store %arg6[%214, %c0_64, %c0_65, %c0_66], %217 {strides = array<i32>} : memref<8x2x8x256xf32, #tpu.memory_space<vmem>>, vector<1x1x8x128xf32>,
      %218 = arith.index_cast %arg7 : i32 to index
      %c2_67 = arith.constant 2 : index
      %c0_68 = arith.constant 0 : index
      %c0_69 = arith.constant 0 : index
      %219 = vector.load %arg1[%218, %c2_67, %c0_68, %c0_69] : memref<8x16x8x128xf32, #tpu.memory_space<vmem>>, vector<1x1x8x128xf32>
      %220 = vector.shape_cast %219 : vector<1x1x8x128xf32> to vector<8x128xf32>
      %221 = arith.index_cast %arg7 : i32 to index
      %c3_70 = arith.constant 3 : index
      %c0_71 = arith.constant 0 : index
      %c0_72 = arith.constant 0 : index
      %222 = vector.load %arg1[%221, %c3_70, %c0_71, %c0_72] : memref<8x16x8x128xf32, #tpu.memory_space<vmem>>, vector<1x1x8x128xf32>
      %223 = vector.shape_cast %222 : vector<1x1x8x128xf32> to vector<8x128xf32>
      %224 = arith.maximumf %220, %223 : vector<8x128xf32>
      %225 = arith.index_cast %arg7 : i32 to index
      %c6_73 = arith.constant 6 : index
      %c0_74 = arith.constant 0 : index
      %c0_75 = arith.constant 0 : index
      %226 = vector.load %arg1[%225, %c6_73, %c0_74, %c0_75] : memref<8x16x8x128xf32, #tpu.memory_space<vmem>>, vector<1x1x8x128xf32>
      %227 = vector.shape_cast %226 : vector<1x1x8x128xf32> to vector<8x128xf32>
      %228 = arith.maximumf %224, %227 : vector<8x128xf32>
      %229 = arith.index_cast %arg7 : i32 to index
      %c7_76 = arith.constant 7 : index
      %c0_77 = arith.constant 0 : index
      %c0_78 = arith.constant 0 : index
      %230 = vector.load %arg1[%229, %c7_76, %c0_77, %c0_78] : memref<8x16x8x128xf32, #tpu.memory_space<vmem>>, vector<1x1x8x128xf32>
      %231 = vector.shape_cast %230 : vector<1x1x8x128xf32> to vector<8x128xf32>
      %232 = arith.maximumf %228, %231 : vector<8x128xf32>
      %cst_79 = arith.constant dense<0.000000e+00> : vector<8xf32>
      %233 = vector.multi_reduction <add>, %232, %cst_79 [1] : vector<8x128xf32> to vector<8xf32>
      %234 = vector.shape_cast %233 : vector<8xf32> to vector<8x1xf32>
      %235 = arith.mulf %232, %232 : vector<8x128xf32>
      %cst_80 = arith.constant dense<0.000000e+00> : vector<8xf32>
      %236 = vector.multi_reduction <add>, %235, %cst_80 [1] : vector<8x128xf32> to vector<8xf32>
      %237 = vector.shape_cast %236 : vector<8xf32> to vector<8x1xf32>
      %cst_81 = arith.constant 7.812500e-03 : f32
      %238 = vector.broadcast %cst_81 : f32 to vector<8x1xf32>
      %239 = arith.mulf %234, %238 : vector<8x1xf32>
      %cst_82 = arith.constant 7.812500e-03 : f32
      %240 = vector.broadcast %cst_82 : f32 to vector<8x1xf32>
      %241 = arith.mulf %237, %240 : vector<8x1xf32>
      %242 = arith.mulf %239, %239 : vector<8x1xf32>
      %243 = arith.subf %241, %242 : vector<8x1xf32>
      %cst_83 = arith.constant 0.000000e+00 : f32
      %244 = vector.broadcast %cst_83 : f32 to vector<8x1xf32>
      %245 = arith.maximumf %243, %244 : vector<8x1xf32>
      %246 = vector.broadcast %239 : vector<8x1xf32> to vector<8x128xf32>
      %247 = arith.subf %232, %246 : vector<8x128xf32>
      %cst_84 = arith.constant 9.99999974E-6 : f32
      %248 = vector.broadcast %cst_84 : f32 to vector<8x1xf32>
      %249 = arith.addf %245, %248 : vector<8x1xf32>
      %250 = math.rsqrt %249 : vector<8x1xf32>
      %251 = vector.broadcast %250 : vector<8x1xf32> to vector<8x128xf32>
      %252 = arith.mulf %247, %251 : vector<8x128xf32>
      %253 = vector.broadcast %1 : vector<1x128xf32> to vector<8x128xf32>
      %254 = arith.mulf %252, %253 : vector<8x128xf32>
      %255 = vector.broadcast %2 : vector<1x128xf32> to vector<8x128xf32>
      %256 = arith.addf %254, %255 : vector<8x128xf32>
      %257 = arith.index_cast %arg7 : i32 to index
      %c0_85 = arith.constant 0 : index
      %c0_86 = arith.constant 0 : index
      %c128 = arith.constant 128 : index
      %258 = vector.load %arg6[%257, %c0_85, %c0_86, %c128] : memref<8x2x8x256xf32, #tpu.memory_space<vmem>>, vector<1x1x8x128xf32>
      %259 = vector.shape_cast %258 : vector<1x1x8x128xf32> to vector<8x128xf32>
      %260 = vector.shape_cast %256 : vector<8x128xf32> to vector<1x1x8x128xf32>
      tpu.vector_store %arg6[%257, %c0_85, %c0_86, %c128], %260 {strides = array<i32>} : memref<8x2x8x256xf32, #tpu.memory_space<vmem>>, vector<1x1x8x128xf32>,
      %261 = arith.index_cast %arg7 : i32 to index
      %c8_87 = arith.constant 8 : index
      %c0_88 = arith.constant 0 : index
      %c0_89 = arith.constant 0 : index
      %262 = vector.load %arg1[%261, %c8_87, %c0_88, %c0_89] : memref<8x16x8x128xf32, #tpu.memory_space<vmem>>, vector<1x1x8x128xf32>
      %263 = vector.shape_cast %262 : vector<1x1x8x128xf32> to vector<8x128xf32>
      %264 = arith.index_cast %arg7 : i32 to index
      %c9_90 = arith.constant 9 : index
      %c0_91 = arith.constant 0 : index
      %c0_92 = arith.constant 0 : index
      %265 = vector.load %arg1[%264, %c9_90, %c0_91, %c0_92] : memref<8x16x8x128xf32, #tpu.memory_space<vmem>>, vector<1x1x8x128xf32>
      %266 = vector.shape_cast %265 : vector<1x1x8x128xf32> to vector<8x128xf32>
      %267 = arith.maximumf %263, %266 : vector<8x128xf32>
      %268 = arith.index_cast %arg7 : i32 to index
      %c12_93 = arith.constant 12 : index
      %c0_94 = arith.constant 0 : index
      %c0_95 = arith.constant 0 : index
      %269 = vector.load %arg1[%268, %c12_93, %c0_94, %c0_95] : memref<8x16x8x128xf32, #tpu.memory_space<vmem>>, vector<1x1x8x128xf32>
      %270 = vector.shape_cast %269 : vector<1x1x8x128xf32> to vector<8x128xf32>
      %271 = arith.maximumf %267, %270 : vector<8x128xf32>
      %272 = arith.index_cast %arg7 : i32 to index
      %c13_96 = arith.constant 13 : index
      %c0_97 = arith.constant 0 : index
      %c0_98 = arith.constant 0 : index
      %273 = vector.load %arg1[%272, %c13_96, %c0_97, %c0_98] : memref<8x16x8x128xf32, #tpu.memory_space<vmem>>, vector<1x1x8x128xf32>
      %274 = vector.shape_cast %273 : vector<1x1x8x128xf32> to vector<8x128xf32>
      %275 = arith.maximumf %271, %274 : vector<8x128xf32>
      %cst_99 = arith.constant dense<0.000000e+00> : vector<8xf32>
      %276 = vector.multi_reduction <add>, %275, %cst_99 [1] : vector<8x128xf32> to vector<8xf32>
      %277 = vector.shape_cast %276 : vector<8xf32> to vector<8x1xf32>
      %278 = arith.mulf %275, %275 : vector<8x128xf32>
      %cst_100 = arith.constant dense<0.000000e+00> : vector<8xf32>
      %279 = vector.multi_reduction <add>, %278, %cst_100 [1] : vector<8x128xf32> to vector<8xf32>
      %280 = vector.shape_cast %279 : vector<8xf32> to vector<8x1xf32>
      %cst_101 = arith.constant 7.812500e-03 : f32
      %281 = vector.broadcast %cst_101 : f32 to vector<8x1xf32>
      %282 = arith.mulf %277, %281 : vector<8x1xf32>
      %cst_102 = arith.constant 7.812500e-03 : f32
      %283 = vector.broadcast %cst_102 : f32 to vector<8x1xf32>
      %284 = arith.mulf %280, %283 : vector<8x1xf32>
      %285 = arith.mulf %282, %282 : vector<8x1xf32>
      %286 = arith.subf %284, %285 : vector<8x1xf32>
      %cst_103 = arith.constant 0.000000e+00 : f32
      %287 = vector.broadcast %cst_103 : f32 to vector<8x1xf32>
      %288 = arith.maximumf %286, %287 : vector<8x1xf32>
      %289 = vector.broadcast %282 : vector<8x1xf32> to vector<8x128xf32>
      %290 = arith.subf %275, %289 : vector<8x128xf32>
      %cst_104 = arith.constant 9.99999974E-6 : f32
      %291 = vector.broadcast %cst_104 : f32 to vector<8x1xf32>
      %292 = arith.addf %288, %291 : vector<8x1xf32>
      %293 = math.rsqrt %292 : vector<8x1xf32>
      %294 = vector.broadcast %293 : vector<8x1xf32> to vector<8x128xf32>
      %295 = arith.mulf %290, %294 : vector<8x128xf32>
      %296 = vector.broadcast %1 : vector<1x128xf32> to vector<8x128xf32>
      %297 = arith.mulf %295, %296 : vector<8x128xf32>
      %298 = vector.broadcast %2 : vector<1x128xf32> to vector<8x128xf32>
      %299 = arith.addf %297, %298 : vector<8x128xf32>
      %300 = arith.index_cast %arg7 : i32 to index
      %c1_105 = arith.constant 1 : index
      %c0_106 = arith.constant 0 : index
      %c0_107 = arith.constant 0 : index
      %301 = vector.load %arg6[%300, %c1_105, %c0_106, %c0_107] : memref<8x2x8x256xf32, #tpu.memory_space<vmem>>, vector<1x1x8x128xf32>
      %302 = vector.shape_cast %301 : vector<1x1x8x128xf32> to vector<8x128xf32>
      %303 = vector.shape_cast %299 : vector<8x128xf32> to vector<1x1x8x128xf32>
      tpu.vector_store %arg6[%300, %c1_105, %c0_106, %c0_107], %303 {strides = array<i32>} : memref<8x2x8x256xf32, #tpu.memory_space<vmem>>, vector<1x1x8x128xf32>,
      %304 = arith.index_cast %arg7 : i32 to index
      %c10_108 = arith.constant 10 : index
      %c0_109 = arith.constant 0 : index
      %c0_110 = arith.constant 0 : index
      %305 = vector.load %arg1[%304, %c10_108, %c0_109, %c0_110] : memref<8x16x8x128xf32, #tpu.memory_space<vmem>>, vector<1x1x8x128xf32>
      %306 = vector.shape_cast %305 : vector<1x1x8x128xf32> to vector<8x128xf32>
      %307 = arith.index_cast %arg7 : i32 to index
      %c11_111 = arith.constant 11 : index
      %c0_112 = arith.constant 0 : index
      %c0_113 = arith.constant 0 : index
      %308 = vector.load %arg1[%307, %c11_111, %c0_112, %c0_113] : memref<8x16x8x128xf32, #tpu.memory_space<vmem>>, vector<1x1x8x128xf32>
      %309 = vector.shape_cast %308 : vector<1x1x8x128xf32> to vector<8x128xf32>
      %310 = arith.maximumf %306, %309 : vector<8x128xf32>
      %311 = arith.index_cast %arg7 : i32 to index
      %c14_114 = arith.constant 14 : index
      %c0_115 = arith.constant 0 : index
      %c0_116 = arith.constant 0 : index
      %312 = vector.load %arg1[%311, %c14_114, %c0_115, %c0_116] : memref<8x16x8x128xf32, #tpu.memory_space<vmem>>, vector<1x1x8x128xf32>
      %313 = vector.shape_cast %312 : vector<1x1x8x128xf32> to vector<8x128xf32>
      %314 = arith.maximumf %310, %313 : vector<8x128xf32>
      %315 = arith.index_cast %arg7 : i32 to index
      %c15_117 = arith.constant 15 : index
      %c0_118 = arith.constant 0 : index
      %c0_119 = arith.constant 0 : index
      %316 = vector.load %arg1[%315, %c15_117, %c0_118, %c0_119] : memref<8x16x8x128xf32, #tpu.memory_space<vmem>>, vector<1x1x8x128xf32>
      %317 = vector.shape_cast %316 : vector<1x1x8x128xf32> to vector<8x128xf32>
      %318 = arith.maximumf %314, %317 : vector<8x128xf32>
      %cst_120 = arith.constant dense<0.000000e+00> : vector<8xf32>
      %319 = vector.multi_reduction <add>, %318, %cst_120 [1] : vector<8x128xf32> to vector<8xf32>
      %320 = vector.shape_cast %319 : vector<8xf32> to vector<8x1xf32>
      %321 = arith.mulf %318, %318 : vector<8x128xf32>
      %cst_121 = arith.constant dense<0.000000e+00> : vector<8xf32>
      %322 = vector.multi_reduction <add>, %321, %cst_121 [1] : vector<8x128xf32> to vector<8xf32>
      %323 = vector.shape_cast %322 : vector<8xf32> to vector<8x1xf32>
      %cst_122 = arith.constant 7.812500e-03 : f32
      %324 = vector.broadcast %cst_122 : f32 to vector<8x1xf32>
      %325 = arith.mulf %320, %324 : vector<8x1xf32>
      %cst_123 = arith.constant 7.812500e-03 : f32
      %326 = vector.broadcast %cst_123 : f32 to vector<8x1xf32>
      %327 = arith.mulf %323, %326 : vector<8x1xf32>
      %328 = arith.mulf %325, %325 : vector<8x1xf32>
      %329 = arith.subf %327, %328 : vector<8x1xf32>
      %cst_124 = arith.constant 0.000000e+00 : f32
      %330 = vector.broadcast %cst_124 : f32 to vector<8x1xf32>
      %331 = arith.maximumf %329, %330 : vector<8x1xf32>
      %332 = vector.broadcast %325 : vector<8x1xf32> to vector<8x128xf32>
      %333 = arith.subf %318, %332 : vector<8x128xf32>
      %cst_125 = arith.constant 9.99999974E-6 : f32
      %334 = vector.broadcast %cst_125 : f32 to vector<8x1xf32>
      %335 = arith.addf %331, %334 : vector<8x1xf32>
      %336 = math.rsqrt %335 : vector<8x1xf32>
      %337 = vector.broadcast %336 : vector<8x1xf32> to vector<8x128xf32>
      %338 = arith.mulf %333, %337 : vector<8x128xf32>
      %339 = vector.broadcast %1 : vector<1x128xf32> to vector<8x128xf32>
      %340 = arith.mulf %338, %339 : vector<8x128xf32>
      %341 = vector.broadcast %2 : vector<1x128xf32> to vector<8x128xf32>
      %342 = arith.addf %340, %341 : vector<8x128xf32>
      %343 = arith.index_cast %arg7 : i32 to index
      %c1_126 = arith.constant 1 : index
      %c0_127 = arith.constant 0 : index
      %c128_128 = arith.constant 128 : index
      %344 = vector.load %arg6[%343, %c1_126, %c0_127, %c128_128] : memref<8x2x8x256xf32, #tpu.memory_space<vmem>>, vector<1x1x8x128xf32>
      %345 = vector.shape_cast %344 : vector<1x1x8x128xf32> to vector<8x128xf32>
      %346 = vector.shape_cast %342 : vector<8x128xf32> to vector<1x1x8x128xf32>
      tpu.vector_store %arg6[%343, %c1_126, %c0_127, %c128_128], %346 {strides = array<i32>} : memref<8x2x8x256xf32, #tpu.memory_space<vmem>>, vector<1x1x8x128xf32>,
    }
    %c8_i32_5 = arith.constant 8 : i32
    return
  }
  func.func @transform_0(%arg0: i32) -> (i32, i32, i32, i32) {
    %c0_i32 = arith.constant 0 : i32
    %c0_i32_0 = arith.constant 0 : i32
    %c0_i32_1 = arith.constant 0 : i32
    %c0_i32_2 = arith.constant 0 : i32
    return %arg0, %c0_i32, %c0_i32_0, %c0_i32_1 : i32, i32, i32, i32
  }
  func.func @transform_1(%arg0: i32) -> (i32, i32) {
    %c0_i32 = arith.constant 0 : i32
    %c0_i32_0 = arith.constant 0 : i32
    %c0_i32_1 = arith.constant 0 : i32
    return %c0_i32, %c0_i32_0 : i32, i32
  }
  func.func @transform_2(%arg0: i32) -> (i32, i32) {
    %c0_i32 = arith.constant 0 : i32
    %c0_i32_0 = arith.constant 0 : i32
    %c0_i32_1 = arith.constant 0 : i32
    return %c0_i32, %c0_i32_0 : i32, i32
  }
  func.func @transform_3(%arg0: i32) -> (i32, i32) {
    %c0_i32 = arith.constant 0 : i32
    %c0_i32_0 = arith.constant 0 : i32
    %c0_i32_1 = arith.constant 0 : i32
    return %c0_i32, %c0_i32_0 : i32, i32
  }
  func.func @transform_4(%arg0: i32) -> (i32, i32, i32) {
    %c0_i32 = arith.constant 0 : i32
    %c0_i32_0 = arith.constant 0 : i32
    %c0_i32_1 = arith.constant 0 : i32
    return %arg0, %c0_i32, %c0_i32_0 : i32, i32, i32
  }
  func.func @transform_5(%arg0: i32) -> (i32, i32, i32, i32) {
    %c0_i32 = arith.constant 0 : i32
    %c0_i32_0 = arith.constant 0 : i32
    %c0_i32_1 = arith.constant 0 : i32
    %c0_i32_2 = arith.constant 0 : i32
    return %arg0, %c0_i32, %c0_i32_0, %c0_i32_1 : i32, i32, i32, i32
  }
}

</mosaic_0001>

<bundles_post_ra>
// kernel: efficientloftr_aggregation_layer.1
= control target key start
LH: loop header
LB: loop body
LE: loop exit
PB: predicated region body
PF: predicated region fallthrough
CT: control target
= control target key end

     0   :  { %11 = vsyncpa [#allocation3], 0  ;;  %s1202_s0 = inlined_call_operand.vmem [shape: f32[16,16,8,128], index: 0, kind: input, shape index: {}]   ;;  %s1203_s1 = inlined_call_operand.vmem [shape: f32[16,128], index: 1, kind: input, shape index: {}]   ;;  %s1204_s2 = inlined_call_operand.vmem [shape: f32[1,128], index: 2, kind: input, shape index: {}]   ;;  %s1205_s3 = inlined_call_operand.vmem [shape: f32[1,128], index: 3, kind: input, shape index: {}]   ;;  %s1206_s4 = inlined_call_operand.hbm [shape: f32[16,8,128], index: 4, kind: output, shape index: {0}]   ;;  %s1207_s5 = inlined_call_operand.vmem [shape: f32[16,2,8,256], index: 5, kind: output, shape index: {1}]  }
   0x1   :  { %13 = vsyncpa [#allocation3 + $0x1], 0  ;;  %s943_s18 = smov 0   ;;  %s945_s19 = smov 0  }
   0x2   :  { %s947_s20 = smov 0   ;;  %s949_s21 = smov 0  }
   0x3 LB: > { %s964_s22 = sadd.s32 4294967295, %s904_s21   ;;  %s703_s23 = sadd.s32 4294967294, %s904_s21   ;;  %s904_s21 = sphi %s949_s21, %s1213_s21   ;;  %s900_s20 = sphi %s947_s20, %s1212_s20   ;;  %s896_s19 = sphi %s945_s19, %s1211_s19   ;;  %s892_s18 = sphi %s943_s18, %s1210_s18  }
   0x4   : > { %s968_s24 = sadd.s32 1, %s904_s21   ;;  %s115_s25 = sadd.s32 1, %s900_s20 }
   0x5   : > { %s112_s26 = ssub.s32 %s904_s21, %s968_s24  ;;  %p125_p0 = scmp.ne.s32.totalorder %s900_s20, %s896_s19 }
   0x6   : > { %p113_p1 = scmp.eq.s32.totalorder %s112_s26, 0  ;;  %p126_p2 = scmp.eq.s32.totalorder %s964_s22, 1 }
   0x7   : > { %p131_p3 = scmp.ne.s32.totalorder %s896_s19, %s892_s18  ;;  %p132_p4 = scmp.eq.s32.totalorder %s703_s23, 1 }
   0x8   : > { %s979_s27 = scalar_select %p113_p1, %s900_s20, %s115_s25  }
   0x9   : > { %p981_p5 = por %p126_p2, %p125_p0  ;;  %p985_p6 = por %p132_p4, %p131_p3 }
   0xa   : > { %p706_p7 = scmp.ge.s32.totalorder %s904_s21, 1  ;;  %p195_p8 = scmp.lt.s32.totalorder %s904_s21, 3 }
   0xc   : > { %p196_p9 = pnand %p706_p7, %p195_p8 }
   0xd   : > { %s219_s30 = sand.u32 (!%p196_p9), 1, %s896_s19   ;;  %s708_s6 = sshll.u32 (!%p196_p9), %s964_s22, 3  ;;  %v996_v0 = vld [vmem:[%s1203_s1] sm:$0xff] (!%p196_p9)  ;;  %v1001_v1 = vld [vmem:[%s1203_s1 + $0x8] sm:$0xff] (!%p196_p9) }
   0xe   : > { %199 = sbr.rel (%p196_p9) target bundleno = 252 (0xfc), region = 36  ;;  %v1006_v2 = vld [vmem:[%s1204_s2] ss:$0 sm:$0xff] (!%p196_p9)  ;;  %s1010_s13 = sshll.u32 (!%p196_p9), %s219_s30, 6 }
   0xf   : > { %p231_p10 = scmp.lt.s32.totalorder (!%p196_p9), %s708_s6, 15  ;;  %v1015_v3 = vld [vmem:[%s1205_s3] ss:$0 sm:$0xff] (!%p196_p9)  ;;  %s221_s10 = scalar_lea.vmem (!%p196_p9), [#allocation2], %s1010_s13 }
  0x10   : > { %s1028_s11 = smov (!%p196_p9), 0  }
  0x15   : > { %s1215_s6 = smov (!%p231_p10, %s708_s6), 15 }
  0x16   : > { %s774_s16 = sshll.u32 %s1215_s6, 7  ;;  %s775_s17 = sshll.u32 %s1215_s6, 5 }
  0x17   : > { %s1020_s26 = scalar_lea.vmem %s1202_s0, %s774_s16  ;;  %s1025_s9 = scalar_lea.vmem %s1207_s5, %s775_s17 }
  0x18 LB: >> { %v258_v4 = vlaneseq  ;;  %s714_s6 = sshll.u32 %s908_s11, 7  ;;  %s776_s14 = sshll.u32 %s908_s11, 5  ;;  %s908_s11 = sphi %s1028_s11, %s254_s11  }
  0x19   : >> { %s1037_s12 = scalar_lea.vmem %s1020_s26, %s714_s6  ;;  %s1125_s15 = scalar_lea.vmem %s1025_s9, %s776_s14 }
  0x1a   : >> { %v1034_v5 = vshrl.u32 %v258_v4, 7  ;;  %v753_v6 = vld [vmem:[%s1037_s12 + $0x10] sm:$0xff]  ;;  %v754_v7 = vld [vmem:[%s1037_s12 + $0x18] sm:$0xff]  ;;  %v429_v13 = vld [vmem:[%s1037_s12] sm:$0xff]  ;;  %s747_s16 = sshll.u32 %s908_s11, 3  ;;  %s254_s11 = sadd.s32 1, %s908_s11  }
  0x1b   : >> { %v755_v8 = vld [vmem:[%s1037_s12 + $0x30] sm:$0xff]  ;;  %v458_v12 = vmax.f32 %v753_v6, %v754_v7  ;;  %v748_v14 = vld [vmem:[%s1037_s12 + $0x8] sm:$0xff]  ;;  %v756_v18 = vld [vmem:[%s1037_s12 + $0x38] sm:$0xff]  ;;  %s427_s17 = scalar_lea.vmem %s221_s10, %s747_s16 [#allocation2]  ;;  %p251_p11 = scmp.ge.s32.totalorder %s254_s11, 8  }
  0x1c   : >> { %v260_v9 = vsub.s32 0, %v1034_v5  ;;  %v268_v10 = vsub.s32 1, %v1034_v5  ;;  %v277_v11 = vsub.s32 2, %v1034_v5  ;;  %v286_v15 = vsub.s32 3, %v1034_v5  ;;  %v749_v20 = vld [vmem:[%s1037_s12 + $0x20] sm:$0xff]  ;;  %v750_v26 = vld [vmem:[%s1037_s12 + $0x28] sm:$0xff] }
  0x1d   : >> { %v295_v16 = vsub.s32 4, %v1034_v5  ;;  %v304_v17 = vsub.s32 5, %v1034_v5  ;;  %v431_v19 = vmax.f32 %v429_v13, %v748_v14  ;;  %v757_v21 = vld [vmem:[%s1037_s12 + $0x40] sm:$0xff]  ;;  %v460_v25 = vmax.f32 %v458_v12, %v755_v8  ;;  %v758_v27 = vld [vmem:[%s1037_s12 + $0x48] sm:$0xff]  ;;  %v764_v33 = vld [vmem:[%s1037_s12 + $0x50] sm:$0xff]  ;;  %s778_s23 = sshll.u32 (%p251_p11), %s964_s22, 10 }
  0x1e   : >> { %v261_v22 = vrot.slane %v996_v0, %v260_v9  ;;  %v269_v23 = vrot.slane %v996_v0, %v268_v10  ;;  %v278_v24 = vrot.slane %v996_v0, %v277_v11  ;;  %v759_v28 = vld [vmem:[%s1037_s12 + $0x60] sm:$0xff]  ;;  %v287_v29 = vrot.slane %v996_v0, %v286_v15  ;;  %v765_v34 = vld [vmem:[%s1037_s12 + $0x58] sm:$0xff]  ;;  %v766_v35 = vld [vmem:[%s1037_s12 + $0x70] sm:$0xff]  ;;  %s1153_s8 = scalar_lea.hbm (%p251_p11), %s1206_s4, %s778_s23  ;;  %s551_s6 = sshll.u32 (%p251_p11), %s221_s10, 4  ;;  %s1157_s6 = int_to_ptr.vmem [resolvable:$true] %s551_s6 }
  0x1f   : >> { %v296_v30 = vrot.slane %v996_v0, %v295_v16  ;;  %v433_v31 = vmax.f32 %v431_v19, %v749_v20  ;;  %v482_v32 = vmax.f32 %v757_v21, %v758_v27  ;;  %v1070_v38 = vmax.f32 %v460_v25, %v756_v18  ;;  %v760_v39 = vld [vmem:[%s1037_s12 + $0x68] sm:$0xff]  ;;  %v767_v45 = vld [vmem:[%s1037_s12 + $0x78] sm:$0xff]  ;;  %s1161_s11 = scalar_lea.sflag (%p251_p11), [#allocation3], %s219_s30  ;;  %s838_s26 = scalar_lea.vmem (%p251_p11), %s1157_s6, 1024 }
  0x20   : >> { %v262_v36 = vmul.f32 %v429_v13, %v261_v22  ;;  %v270_v37 = vmul.f32 %v748_v14, %v269_v23  ;;  %v509_v40 = vmax.f32 %v764_v33, %v765_v34  ;;  %v279_v41 = vmul.f32 %v753_v6, %v278_v24  ;;  %p839_p12 = scmp.ne.s32.totalorder (%p251_p11), %s1157_s6, %s838_s26  ;;  %s910_s22 = smov (%p251_p11), [#allocation2]  }
  0x21   : >> { %v305_v42 = vrot.slane %v996_v0, %v304_v17  ;;  %v1076_v43 = vmax.f32 %v433_v31, %v750_v26  ;;  %v484_v44 = vmax.f32 %v482_v32, %v759_v28  ;;  %v288_v47 = vmul.f32 %v754_v7, %v287_v29  ;;  %463 = vadd.xlane.f32.xlu1 %v1070_v38  ;;  %s842_s9 = sshll.u32 (%p251_p11), %s910_s22, 4  ;;  %s843_s9 = int_to_ptr.vmem [resolvable:$false] %s842_s9 }
  0x22   : >> { %v271_v46 = vadd.f32 %v270_v37, %v262_v36  ;;  %v511_v48 = vmax.f32 %v509_v40, %v766_v35  ;;  %v313_v49 = vsub.s32 6, %v1034_v5  ;;  %v297_v52 = vmul.f32 %v749_v20, %v296_v30  ;;  %p840_p13 = pnand (%p251_p11), %p839_p12, %p981_p5  ;;  %s844_s12 = scalar_lea.vmem (%p251_p11), %s843_s9, 2048 }
  0x23   : >> { %436 = vadd.xlane.f32.xlu0 %v1076_v43  ;;  %v1082_v50 = vmax.f32 %v484_v44, %v760_v39  ;;  %v322_v53 = vsub.s32 7, %v1034_v5  ;;  %v306_v57 = vmul.f32 %v750_v26, %v305_v42  ;;  %v465_v59 = vmul.f32 %v1070_v38, %v1070_v38  ;;  %p845_p1 = scmp.lt.s32.totalorder (%p251_p11), %s1157_s6, %s843_s9  ;;  %p846_p2 = scmp.lt.s32.totalorder (%p251_p11), %s844_s12, %s838_s26 }
  0x24   : >> { %v280_v51 = vadd.f32 %v279_v41, %v271_v46  ;;  %v1085_v54 = vmax.f32 %v511_v48, %v767_v45  ;;  %v314_v55 = vrot.slane %v996_v0, %v313_v49  ;;  %v438_v60 = vmul.f32 %v1076_v43, %v1076_v43  ;;  %p841_p0 = pneg (%p251_p11), %p840_p13 }
  0x25   : >> { %v323_v58 = vrot.slane %v996_v0, %v322_v53  ;;  %487 = vadd.xlane.f32.xlu1 %v1082_v50  ;;  %v332_v63 = vrot.slane %v1001_v1, %v260_v9  ;;  %v341_v7 = vrot.slane %v1001_v1, %v268_v10  ;;  %v350_v14 = vrot.slane %v1001_v1, %v277_v11  ;;  %p847_p3 = por (%p251_p11), %p846_p2, %p845_p1 }
  0x26   : >> { %v289_v56 = vadd.f32 %v288_v47, %v280_v51  ;;  %v315_v62 = vmul.f32 %v755_v8, %v314_v55  ;;  %v359_v8 = vrot.slane %v1001_v1, %v286_v15  ;;  %v368_v10 = vrot.slane %v1001_v1, %v295_v16 }
  0x27   : >> { %514 = vadd.xlane.f32.xlu0 %v1085_v54  ;;  %v324_v6 = vmul.f32 %v756_v18, %v323_v58  ;;  %v333_v13 = vmul.f32 %v757_v21, %v332_v63  ;;  %v342_v20 = vmul.f32 %v758_v27, %v341_v7  ;;  %v351_v9 = vmul.f32 %v764_v33, %v350_v14  ;;  %p848_p4 = pnand (%p251_p11), %p847_p3, %p841_p0 }
  0x28   : >> { %v298_v61 = vadd.f32 %v297_v52, %v289_v56  ;;  %v360_v23 = vmul.f32 %v765_v34, %v359_v8  ;;  %v377_v21 = vrot.slane %v1001_v1, %v304_v17  ;;  %v369_v11 = vmul.f32 %v759_v28, %v368_v10 }
  0x29   : >> { %466 = vadd.xlane.f32.xlu1 %v465_v59  ;;  %v386_v25 = vrot.slane %v1001_v1, %v313_v49  ;;  %v395_v15 = vrot.slane %v1001_v1, %v322_v53  ;;  %v489_v17 = vmul.f32 %v1082_v50, %v1082_v50  ;;  %v516_v28 = vmul.f32 %v1085_v54, %v1085_v54 }
  0x2a   : >> { %v307_v4 = vadd.f32 %v306_v57, %v298_v61  ;;  %v378_v27 = vmul.f32 %v760_v39, %v377_v21 }
  0x2b   : >> { %439 = vadd.xlane.f32.xlu0 %v438_v60  ;;  %v387_v30 = vmul.f32 %v766_v35, %v386_v25  ;;  %v396_v32 = vmul.f32 %v767_v45, %v395_v15 }
  0x2c   : >> { %v316_v12 = vadd.f32 %v315_v62, %v307_v4 }
  0x2e   : >> { %v325_v19 = vadd.f32 %v324_v6, %v316_v12 }
  0x30   : >> { %v334_v22 = vadd.f32 %v333_v13, %v325_v19 }
  0x32   : >> { %v343_v18 = vadd.f32 %v342_v20, %v334_v22 }
  0x34   : >> { %v352_v24 = vadd.f32 %v351_v9, %v343_v18 }
  0x36   : >> { %v361_v26 = vadd.f32 %v360_v23, %v352_v24 }
  0x38   : >> { %v370_v29 = vadd.f32 %v369_v11, %v361_v26 }
  0x3a   : >> { %v379_v31 = vadd.f32 %v378_v27, %v370_v29 }
  0x3c   : >> { %v388_v33 = vadd.f32 %v387_v30, %v379_v31 }
  0x3e   : >> { %v1111_v16 = vadd.f32 %v396_v32, %v388_v33 }
  0x40   : >> { %398 = vadd.xlane.f32.xlu0 %v1111_v16  ;;  %v400_v5 = vmul.f32 %v1111_v16, %v1111_v16 }
  0x42   : >> { %401 = vadd.xlane.f32.xlu1 %v400_v5 }
  0x44   : >> { %490 = vadd.xlane.f32.xlu0 %v489_v17 }
  0x46   : >> { %517 = vadd.xlane.f32.xlu1 %v516_v28 }
  0xae   : >> { %v464_v34 = vpop.xlane.xlu1 %463 }
  0xaf   : >> { %v468_v36 = vmul.f32 0.0078125, %v464_v34 }
  0xb0   : >> { %v437_v35 = vpop.xlane.xlu0 %436 }
  0xb1   : >> { %v441_v37 = vmul.f32 0.0078125, %v437_v35  ;;  %v470_v41 = vmul.f32 %v468_v36, %v468_v36  ;;  %v473_v56 = vsub.f32 %v1070_v38, %v468_v36 }
  0xb2   : >> { %v488_v39 = vpop.xlane.xlu1 %487 }
  0xb3   : >> { %v443_v42 = vmul.f32 %v441_v37, %v441_v37  ;;  %v446_v58 = vsub.f32 %v1076_v43, %v441_v37  ;;  %v492_v63 = vmul.f32 0.0078125, %v488_v39 }
  0xb4   : >> { %v515_v40 = vpop.xlane.xlu0 %514 }
  0xb5   : >> { %v519_v38 = vmul.f32 0.0078125, %v515_v40  ;;  %v494_v8 = vmul.f32 %v492_v63, %v492_v63  ;;  %v497_v32 = vsub.f32 %v1082_v50, %v492_v63 }
  0xb6   : >> { %v467_v44 = vpop.xlane.xlu1 %466 }
  0xb7   : >> { %v469_v45 = vmul.f32 0.0078125, %v467_v44  ;;  %v521_v18 = vmul.f32 %v519_v38, %v519_v38  ;;  %v524_v17 = vsub.f32 %v1085_v54, %v519_v38 }
  0xb8   : >> { %v440_v46 = vpop.xlane.xlu0 %439 }
  0xb9   : >> { %v442_v47 = vmul.f32 0.0078125, %v440_v46  ;;  %v471_v48 = vsub.f32 %v469_v45, %v470_v41 }
  0xbb   : >> { %v444_v49 = vsub.f32 %v442_v47, %v443_v42  ;;  %v472_v51 = vmax.f32 %v471_v48, 0.0 }
  0xbd   : >> { %v445_v52 = vmax.f32 %v444_v49, 0.0  ;;  %v474_v53 = vadd.f32 1e-05, %v472_v51 }
  0xbf   : >> { %v447_v55 = vadd.f32 1e-05, %v445_v52  ;;  %828 = vrsqrt.f32 %v474_v53 }
  0xc1   : >> { %830 = vrsqrt.f32 %v447_v55 }
  0xc9   : >> { %v829_v57 = vpop.eup %828 }
  0xca   : >> { %v476_v60 = vmul.f32 %v829_v57, %v473_v56 }
  0xcb   : >> { %v831_v59 = vpop.eup %830 }
  0xcc   : >> { %v449_v61 = vmul.f32 %v831_v59, %v446_v58  ;;  %v477_v4 = vmul.f32 %v1006_v2, %v476_v60 }
  0xcd   : >> { %v399_v62 = vpop.xlane.xlu0 %398 }
  0xce   : >> { %v403_v6 = vmul.f32 0.0078125, %v399_v62  ;;  %v450_v7 = vmul.f32 %v1006_v2, %v449_v61  ;;  %v478_v13 = vadd.f32 %v1015_v3, %v477_v4 }
  0xcf   : >> { %v402_v12 = vpop.xlane.xlu1 %401 }
  0xd0   : >> { %v405_v43 = vmul.f32 %v403_v6, %v403_v6  ;;  %v404_v14 = vmul.f32 0.0078125, %v402_v12  ;;  %v451_v19 = vadd.f32 %v1015_v3, %v450_v7  ;;  %479 = vst [vmem:[%s1125_s15 + $0x8] sm:$0xff] %v478_v13  ;;  %v408_v30 = vsub.f32 %v1111_v16, %v403_v6 }
  0xd1   : >> { %v491_v20 = vpop.xlane.xlu0 %490 }
  0xd2   : >> { %v406_v22 = vsub.f32 %v404_v14, %v405_v43  ;;  %v493_v9 = vmul.f32 0.0078125, %v491_v20  ;;  %455 = vst [vmem:[%s1125_s15] sm:$0xff] %v451_v19 }
  0xd3   : >> { %v518_v10 = vpop.xlane.xlu1 %517 }
  0xd4   : >> { %v407_v23 = vmax.f32 %v406_v22, 0.0  ;;  %v495_v21 = vsub.f32 %v493_v9, %v494_v8  ;;  %v520_v24 = vmul.f32 0.0078125, %v518_v10 }
  0xd6   : >> { %v409_v11 = vadd.f32 1e-05, %v407_v23  ;;  %v496_v25 = vmax.f32 %v495_v21, 0.0  ;;  %v522_v26 = vsub.f32 %v520_v24, %v521_v18 }
  0xd8   : >> { %832 = vrsqrt.f32 %v409_v11  ;;  %v498_v27 = vadd.f32 1e-05, %v496_v25  ;;  %v523_v15 = vmax.f32 %v522_v26, 0.0 }
  0xda   : >> { %834 = vrsqrt.f32 %v498_v27  ;;  %v525_v29 = vadd.f32 1e-05, %v523_v15 }
  0xdc   : >> { %836 = vrsqrt.f32 %v525_v29 }
  0xe2   : >> { %v833_v31 = vpop.eup %832 }
  0xe3   : >> { %v411_v33 = vmul.f32 %v833_v31, %v408_v30 }
  0xe4   : >> { %v835_v5 = vpop.eup %834 }
  0xe5   : >> { %v418_v28 = vmul.f32 %v1006_v2, %v411_v33  ;;  %v500_v34 = vmul.f32 %v835_v5, %v497_v32 }
  0xe6   : >> { %v837_v35 = vpop.eup %836 }
  0xe7   : >> { %v425_v36 = vadd.f32 %v1015_v3, %v418_v28  ;;  %v501_v16 = vmul.f32 %v1006_v2, %v500_v34  ;;  %v527_v37 = vmul.f32 %v837_v35, %v524_v17  ;;  %253 = sbr.rel (!%p251_p11) target bundleno = 24 (0x18), region = 109 }
  0xe9   : >> { %428 = vst [vmem:[%s427_s17] sm:$0xff] %v425_v36  ;;  %v502_v50 = vadd.f32 %v1015_v3, %v501_v16  ;;  %v528_v39 = vmul.f32 %v1006_v2, %v527_v37 }
  0xeb   : >> { %763 = vst [vmem:[%s1125_s15 + $0x10] sm:$0xff] %v502_v50  ;;  %v529_v40 = vadd.f32 %v1015_v3, %v528_v39 }
  0xed   : >> { %768 = vst [vmem:[%s1125_s15 + $0x18] sm:$0xff] %v529_v40 }
  0xee   : > { %851 = shalt.err (!%p848_p4)
}
  0xef   : > { %s852_s30 = scalar_lea.hbm %s1153_s8, 1024  ;;  %s856_s14 = scalar_lea.hbm %s1206_s4, 2048 }
  0xf0   : > { %p853_p7 = scmp.ne.s32.totalorder %s1153_s8, %s852_s30  ;;  %p857_p10 = scmp.lt.u32.totalorder %s1153_s8, %s1206_s4 }
  0xf1   : > { %p858_p11 = scmp.lt.u32.totalorder %s856_s14, %s852_s30  ;;  %p860_p13 = scmp.lt.u32.totalorder %s852_s30, %s1153_s8 }
  0xf2   : > { %p854_p8 = pnand %p853_p7, %p981_p5 }
  0xf3   : > { %p859_p12 = por %p858_p11, %p857_p10 }
  0xf4   : > { %p855_p9 = pneg %p854_p8 }
  0xf5   : > { %p861_p0 = por %p860_p13, %p859_p12 }
  0xf7   : > { %p862_p1 = pnand %p861_p0, %p855_p9 }
  0xf9   : > { %865 = shalt.err (!%p862_p1)
}
  0xfa   : > { %s911_s17 = smov 128   ;;  %s912_s23 = smov 8  }
  0xfb   : > { %779 = dma.vmem_to_hbm [thread:$0]  (%p981_p5), %s1157_s6, 1024, %s1153_s8, %s1161_s11, %s911_s17, %s911_s17, %s912_s23  }
  0xfc PF: > { %p785_p2 = scmp.ge.s32.totalorder %s904_s21, 2  ;;  %s570_s25 = sand.u32 1, %s892_s18  }
  0xfd   : > { %s571_s7 = scalar_lea.sflag [#allocation3], %s570_s25 }
  0xfe   : > { %p782_p3 = pnand %p785_p2, %p985_p6 }
 0x100   : > { %887 = dma.done.wait (!%p782_p3), %s571_s7, 1024  }
 0x101   : > { %889 = vsyncadd (!%p782_p3), %s571_s7, 4294966272  ;;  %p16_p4 = scmp.ge.s32.totalorder %s968_s24, 4   ;;  %s1210_s18 = smov %s896_s19 }
 0x102   : > { %s1211_s19 = smov %s900_s20  ;;  %s1212_s20 = smov %s979_s27 }
 0x103   : > { %s1213_s21 = smov %s968_s24  ;;  %18 = sbr.rel (!%p16_p4) target bundleno = 3 (0x3), region = 120 }
 0x10a   :  { %585 = vsyncpa [#allocation3], 1 }
 0x10b   :  { %587 = vsyncpa [#allocation3 + $0x1], 1 }

</bundles_post_ra>
